<compile_context>
chip_gen: v7x
topology: tpu7x:2x2x1
jax: 0.10.0
libtpu: 0.0.40
codegen_flags: <defaults>
</compile_context>

<pallas_src>
import functools

import jax
import jax.numpy as jnp
from jax import lax
from jax.experimental import pallas as pl
from jax.experimental.pallas import tpu as pltpu

# Module hyper-parameters (defaults of Attention(dim, heads=8, dim_head=16, dropout=0.0))
HEADS = 8
DIM_HEAD = 16
INNER = HEADS * DIM_HEAD          # 128
SCALE = DIM_HEAD ** (-0.5)        # 0.25 (exact in bf16; folded into the Q columns)
_NEG = -1e30                      # additive mask for cross-batch-element score entries

_ROWS_PER_CHUNK = 128             # dense-masked score tile is (C, C), C ~ 128 rows
_ROWS_PER_STEP = 512              # flattened rows handled per grid step


def _attention_kernel(x_ref, wqkv_ref, wo_ref, b_ref, o_ref, qkv_s, ctx_s, *,
                      cb, n_chunks):
    """One grid step: `n_chunks` chunks of `cb` batch elements each."""
    # x_ref   : (BT, N, DIM) f32        BT = cb * n_chunks batch elements
    # wqkv_ref: (DIM, 3*INNER) bf16     fused [Wq*scale | Wk | Wv]
    # wo_ref  : (INNER, DIM) bf16       fused output projection
    # b_ref   : (1, DIM) f32            output bias
    # o_ref   : (BT, N, DIM)
    # qkv_s   : (C, 3*INNER) bf16 VMEM scratch, C = cb * N rows per chunk
    # ctx_s   : (C, INNER)  f32  VMEM scratch (per-head AV outputs, lane-blocked)
    bt, n, dim = x_ref.shape
    c_rows = cb * n

    # Block-diagonal additive mask, built once per step from 2-D iotas.
    # Row i / col j belong to the same batch element iff floor((i+.5)/n) equals
    # floor((j+.5)/n); the float path avoids relying on vector integer division.
    inv_n = 1.0 / float(n)
    row_idx = lax.broadcasted_iota(jnp.int32, (c_rows, c_rows), 0).astype(jnp.float32)
    col_idx = lax.broadcasted_iota(jnp.int32, (c_rows, c_rows), 1).astype(jnp.float32)
    same = jnp.floor((row_idx + 0.5) * inv_n) == jnp.floor((col_idx + 0.5) * inv_n)
    mask = jnp.where(same, 0.0, _NEG).astype(jnp.float32)

    def chunk_body(c_idx):
        rb = c_idx * cb                            # first batch element of the chunk
        # (cb, N, DIM) -> (C, DIM): major-dim collapse, free.
        x_c = x_ref[pl.ds(rb, cb)].reshape(c_rows, dim).astype(jnp.bfloat16)

        # Fused lane-dense QKV projection (all heads, q/k/v in one matmul);
        # parked in VMEM so per-head 16-lane slices are cheap ref loads and the
        # (C, 3*INNER) value is not held live across the unrolled head loop.
        qkv_s[...] = jnp.dot(x_c, wqkv_ref[...],
                             preferred_element_type=jnp.float32).astype(jnp.bfloat16)

        for h in range(HEADS):                     # static unroll over 8 heads
            q = qkv_s[:, h * DIM_HEAD:(h + 1) * DIM_HEAD]
            k = qkv_s[:, INNER + h * DIM_HEAD:INNER + (h + 1) * DIM_HEAD]
            v = qkv_s[:, 2 * INNER + h * DIM_HEAD:2 * INNER + (h + 1) * DIM_HEAD]

            # Lane-dense (C, C) scores; cross-batch pairs pushed to -inf.
            sim = lax.dot_general(q, k, (((1,), (1,)), ((), ())),
                                  preferred_element_type=jnp.float32) + mask
            sim = sim - jnp.max(sim, axis=-1, keepdims=True)
            p = jnp.exp(sim)
            # Deferred softmax normalisation: scale the (C, DIM_HEAD) AV result
            # instead of the (C, C) attention matrix (EUP approx reciprocal).
            r = pl.reciprocal(jnp.sum(p, axis=-1, keepdims=True), approx=True)
            out_h = jnp.dot(p.astype(jnp.bfloat16), v,
                            preferred_element_type=jnp.float32) * r
            # TODO(synk): dropout(p=0.0) / eval mode is identity; RNG dropout not implemented.
            ctx_s[:, h * DIM_HEAD:(h + 1) * DIM_HEAD] = out_h

        # Fused output projection: one full-depth (C, 128) @ (128, DIM) matmul.
        y = jnp.dot(ctx_s[...].astype(jnp.bfloat16), wo_ref[...],
                    preferred_element_type=jnp.float32) + b_ref[...]
        # (C, DIM) -> (cb, N, DIM): major-dim split, free.
        o_ref[pl.ds(rb, cb)] = y.reshape(cb, n, dim).astype(o_ref.dtype)

    if n_chunks == 1:
        chunk_body(0)
    else:
        @pl.loop(0, n_chunks)
        def _(c_idx):
            chunk_body(c_idx)


def attention_forward(x, w_qkv, w_out, b_out):
    """Forward pass of TabTransformer Attention.

    x     : (B, N, DIM) float32
    w_qkv : (3*INNER, DIM)  == nn.Linear(dim, inner*3, bias=False).weight
    w_out : (DIM, INNER)    == nn.Linear(inner, dim).weight
    b_out : (DIM,)          == nn.Linear(inner, dim).bias
    """
    B, N, DIM = x.shape

    # ---- weight preprocessing (trace time) -----------------------------------
    # Single fused QKV projection matrix (torch computes x @ W_qkv.T) with the
    # 1/sqrt(dim_head) scale folded into the Q columns; bf16 for the MXU.
    w_q = w_qkv[0 * INNER:1 * INNER].T * SCALE
    w_k = w_qkv[1 * INNER:2 * INNER].T
    w_v = w_qkv[2 * INNER:3 * INNER].T
    wqkv_f = jnp.concatenate([w_q, w_k, w_v], axis=1).astype(jnp.bfloat16)  # (DIM, 3*INNER)
    wo_f = w_out.T.astype(jnp.bfloat16)                                     # (INNER, DIM)
    bias = b_out.reshape(1, DIM).astype(jnp.float32)

    # ---- tiling --------------------------------------------------------------
    # A "chunk" is the group of batch elements whose flattened rows form one
    # dense-masked (C, C) score tile (C ~ 128 rows).  A grid step processes
    # n_chunks chunks (~512 flattened rows) to amortise per-step overhead.  No
    # forced >=2-step split (it only shrinks tiles on single-core v5e/v6e);
    # steps stay "parallel" so v7x megacore shards them when B is large.
    cb = max(1, min(B, _ROWS_PER_CHUNK // N))
    n_chunks = max(1, min(_ROWS_PER_STEP // (cb * N), pl.cdiv(B, cb)))
    BT = cb * n_chunks
    steps = pl.cdiv(B, BT)
    B_pad = steps * BT
    x_in = x if B_pad == B else jnp.pad(x, ((0, B_pad - B), (0, 0), (0, 0)))
    c_rows = cb * N

    kernel = functools.partial(_attention_kernel, cb=cb, n_chunks=n_chunks)

    out = pl.pallas_call(
        kernel,
        out_shape=jax.ShapeDtypeStruct((B_pad, N, DIM), x.dtype),
        grid_spec=pltpu.PrefetchScalarGridSpec(
            num_scalar_prefetch=0,
            grid=(steps,),
            in_specs=[
                pl.BlockSpec((BT, N, DIM), lambda b: (b, 0, 0)),
                pl.BlockSpec((DIM, 3 * INNER), lambda b: (0, 0)),
                pl.BlockSpec((INNER, DIM), lambda b: (0, 0)),
                pl.BlockSpec((1, DIM), lambda b: (0, 0)),
            ],
            out_specs=pl.BlockSpec((BT, N, DIM), lambda b: (b, 0, 0)),
            scratch_shapes=[
                pltpu.VMEM((c_rows, 3 * INNER), jnp.bfloat16),   # fused qkv staging
                pltpu.VMEM((c_rows, INNER), jnp.float32),        # lane-blocked head outputs
            ],
        ),
        compiler_params=pltpu.CompilerParams(
            dimension_semantics=("parallel",)),
    )(x_in, wqkv_f, wo_f, bias)

    return out[:B] if B_pad != B else out


def attention_reference(x, w_qkv, w_out, b_out):
    """Pure-JAX f32 reference mirroring the PyTorch forward (torch weight layout)."""
    B, N, DIM = x.shape
    qkv = jnp.einsum("bnd,ed->bne", x, w_qkv)              # x @ W_qkv.T
    q, k, v = jnp.split(qkv, 3, axis=-1)

    def split_heads(t):
        return t.reshape(B, N, HEADS, DIM_HEAD).transpose(0, 2, 1, 3)

    q, k, v = map(split_heads, (q, k, v))
    sim = jnp.einsum("bhid,bhjd->bhij", q, k) * SCALE
    attn = jax.nn.softmax(sim, axis=-1)
    out = jnp.einsum("bhij,bhjd->bhid", attn, v)
    out = out.transpose(0, 2, 1, 3).reshape(B, N, INNER)
    return jnp.einsum("bne,de->bnd", out, w_out) + b_out   # out @ W_out.T + b


if __name__ == "__main__":
    N, DIM = 8, 32                                         # tokens (columns), model dim

    key = jax.random.PRNGKey(0)
    k_x, k_qkv, k_wo, k_bo, k_x2, k_x3 = jax.random.split(key, 6)

    # Parameters in nn.Linear layout, uniform(+/- 1/sqrt(fan_in)) like PyTorch.
    bound_qkv = 1.0 / (DIM ** 0.5)
    bound_out = 1.0 / (INNER ** 0.5)
    w_qkv = jax.random.uniform(k_qkv, (3 * INNER, DIM),
                               minval=-bound_qkv, maxval=bound_qkv, dtype=jnp.float32)
    w_out = jax.random.uniform(k_wo, (DIM, INNER),
                               minval=-bound_out, maxval=bound_out, dtype=jnp.float32)
    b_out = jax.random.uniform(k_bo, (DIM,),
                               minval=-bound_out, maxval=bound_out, dtype=jnp.float32)

    def check(xb):
        y = jax.block_until_ready(attention_forward(xb, w_qkv, w_out, b_out))
        y_ref = attention_reference(xb, w_qkv, w_out, b_out)
        assert y.shape == xb.shape
        assert jnp.allclose(y, y_ref, atol=5e-2, rtol=5e-2), (
            f"mismatch vs JAX reference (max abs err {jnp.max(jnp.abs(y - y_ref))})")

    # 1) Small canonical run: single 16-row chunk, single grid step.
    check(jax.random.normal(k_x, (2, N, DIM), dtype=jnp.float32))
    # 2) Ragged batch (B=7): one 56-row chunk, non-multiple-of-8 row count.
    check(jax.random.normal(k_x2, (7, N, DIM), dtype=jnp.float32))
    # 3) Larger batch (B=65): 4 chunks per step via pl.loop, 2 "parallel" grid
    #    steps, batch padding 65 -> 128.
    check(jax.random.normal(k_x3, (65, N, DIM), dtype=jnp.float32))

    print("KERNEL_OK")
</pallas_src>

<mosaic_0001>
module attributes {stable_mosaic.version = 11 : i64} {
  func.func @_attention_kernel(%arg0: i32, %arg1: memref<2x8x32xf32, #tpu.memory_space<vmem>>, %arg2: memref<32x384xbf16, #tpu.memory_space<vmem>>, %arg3: memref<128x32xbf16, #tpu.memory_space<vmem>>, %arg4: memref<1x32xf32, #tpu.memory_space<vmem>>, %arg5: memref<2x8x32xf32, #tpu.memory_space<vmem>>, %arg6: memref<16x384xbf16, #tpu.memory_space<vmem>>, %arg7: memref<16x128xf32, #tpu.memory_space<vmem>>) attributes {dimension_semantics = [#tpu.dimension_semantics<parallel>], iteration_bounds = array<i64: 1>, scalar_prefetch = 0 : i64, scratch_operands = 2 : i64, tpu.core_type = #tpu.core_type<tc>, window_params = [{transform_indices = @transform_0, window_bounds = array<i64: 2, 8, 32>}, {pipeline_mode = #tpu.pipeline_mode<synchronous>, transform_indices = @transform_1, window_bounds = array<i64: 32, 384>}, {pipeline_mode = #tpu.pipeline_mode<synchronous>, transform_indices = @transform_2, window_bounds = array<i64: 128, 32>}, {pipeline_mode = #tpu.pipeline_mode<synchronous>, transform_indices = @transform_3, window_bounds = array<i64: 1, 32>}, {transform_indices = @transform_4, window_bounds = array<i64: 2, 8, 32>}]} {
    %0 = tpu.iota {dimensions = array<i32: 0>} : vector<16x16xi32>
    %1 = arith.sitofp %0 : vector<16x16xi32> to vector<16x16xf32>
    %2 = tpu.iota {dimensions = array<i32: 1>} : vector<16x16xi32>
    %3 = arith.sitofp %2 : vector<16x16xi32> to vector<16x16xf32>
    %cst = arith.constant 5.000000e-01 : f32
    %4 = vector.broadcast %cst : f32 to vector<16x16xf32>
    %5 = arith.addf %1, %4 : vector<16x16xf32>
    %cst_0 = arith.constant 1.250000e-01 : f32
    %6 = vector.broadcast %cst_0 : f32 to vector<16x16xf32>
    %7 = arith.mulf %5, %6 : vector<16x16xf32>
    %8 = math.floor %7 : vector<16x16xf32>
    %cst_1 = arith.constant 5.000000e-01 : f32
    %9 = vector.broadcast %cst_1 : f32 to vector<16x16xf32>
    %10 = arith.addf %3, %9 : vector<16x16xf32>
    %cst_2 = arith.constant 1.250000e-01 : f32
    %11 = vector.broadcast %cst_2 : f32 to vector<16x16xf32>
    %12 = arith.mulf %10, %11 : vector<16x16xf32>
    %13 = math.floor %12 : vector<16x16xf32>
    %14 = arith.cmpf oeq, %8, %13 : vector<16x16xf32>
    %cst_3 = arith.constant 0.000000e+00 : f32
    %cst_4 = arith.constant -1.000000e+30 : f32
    %15 = vector.broadcast %cst_3 : f32 to vector<16x16xf32>
    %16 = vector.broadcast %cst_4 : f32 to vector<16x16xf32>
    %17 = arith.select %14, %15, %16 : vector<16x16xi1>, vector<16x16xf32>
    %c0 = arith.constant 0 : index
    %c0_5 = arith.constant 0 : index
    %c0_6 = arith.constant 0 : index
    %18 = vector.load %arg1[%c0, %c0_5, %c0_6] : memref<2x8x32xf32, #tpu.memory_space<vmem>>, vector<2x8x32xf32>
    %19 = vector.shape_cast %18 : vector<2x8x32xf32> to vector<16x32xf32>
    %20 = arith.truncf %19 : vector<16x32xf32> to vector<16x32xbf16>
    %c0_7 = arith.constant 0 : index
    %c0_8 = arith.constant 0 : index
    %21 = vector.load %arg2[%c0_7, %c0_8] : memref<32x384xbf16, #tpu.memory_space<vmem>>, vector<32x384xbf16>
    %cst_9 = arith.constant dense<0.000000e+00> : vector<16x384xf32>
    %22 = tpu.matmul %20, %21, %cst_9 {dimension_numbers = #tpu.dot_dimension_numbers<[1], [0], [0], [1], [0, 0, 1, 1], [], []>} : vector<16x32xbf16>, vector<32x384xbf16>, vector<16x384xf32> -> vector<16x384xf32>
    %23 = arith.truncf %22 : vector<16x384xf32> to vector<16x384xbf16>
    %c0_10 = arith.constant 0 : index
    %c0_11 = arith.constant 0 : index
    %24 = vector.load %arg6[%c0_10, %c0_11] : memref<16x384xbf16, #tpu.memory_space<vmem>>, vector<16x384xbf16>
    tpu.vector_store %arg6[%c0_10, %c0_11], %23 {strides = array<i32>} : memref<16x384xbf16, #tpu.memory_space<vmem>>, vector<16x384xbf16>,
    %c0_12 = arith.constant 0 : index
    %c0_13 = arith.constant 0 : index
    %25 = vector.load %arg6[%c0_12, %c0_13] : memref<16x384xbf16, #tpu.memory_space<vmem>>, vector<16x16xbf16>
    %c0_14 = arith.constant 0 : index
    %c128 = arith.constant 128 : index
    %26 = vector.load %arg6[%c0_14, %c128] : memref<16x384xbf16, #tpu.memory_space<vmem>>, vector<16x16xbf16>
    %c0_15 = arith.constant 0 : index
    %c256 = arith.constant 256 : index
    %27 = vector.load %arg6[%c0_15, %c256] : memref<16x384xbf16, #tpu.memory_space<vmem>>, vector<16x16xbf16>
    %cst_16 = arith.constant dense<0.000000e+00> : vector<16x16xf32>
    %28 = tpu.matmul %25, %26, %cst_16 {dimension_numbers = #tpu.dot_dimension_numbers<[1], [1], [0], [0], [0, 0, 1, 0], [], []>} : vector<16x16xbf16>, vector<16x16xbf16>, vector<16x16xf32> -> vector<16x16xf32>
    %29 = arith.addf %28, %17 : vector<16x16xf32>
    %cst_17 = arith.constant dense<0xFF800000> : vector<16xf32>
    %30 = vector.multi_reduction <maximumf>, %29, %cst_17 [1] : vector<16x16xf32> to vector<16xf32>
    %31 = vector.shape_cast %30 : vector<16xf32> to vector<16x1xf32>
    %32 = vector.broadcast %31 : vector<16x1xf32> to vector<16x16xf32>
    %33 = arith.subf %29, %32 : vector<16x16xf32>
    %34 = math.exp %33 : vector<16x16xf32>
    %cst_18 = arith.constant dense<0.000000e+00> : vector<16xf32>
    %35 = vector.multi_reduction <add>, %34, %cst_18 [1] : vector<16x16xf32> to vector<16xf32>
    %36 = vector.shape_cast %35 : vector<16xf32> to vector<16x1xf32>
    %37 = tpu.reciprocal %36 {approx = true} : vector<16x1xf32> -> vector<16x1xf32>
    %38 = arith.truncf %34 : vector<16x16xf32> to vector<16x16xbf16>
    %cst_19 = arith.constant dense<0.000000e+00> : vector<16x16xf32>
    %39 = tpu.matmul %38, %27, %cst_19 {dimension_numbers = #tpu.dot_dimension_numbers<[1], [0], [0], [1], [0, 0, 1, 1], [], []>} : vector<16x16xbf16>, vector<16x16xbf16>, vector<16x16xf32> -> vector<16x16xf32>
    %40 = vector.broadcast %37 : vector<16x1xf32> to vector<16x16xf32>
    %41 = arith.mulf %39, %40 : vector<16x16xf32>
    %c0_20 = arith.constant 0 : index
    %c0_21 = arith.constant 0 : index
    %42 = vector.load %arg7[%c0_20, %c0_21] : memref<16x128xf32, #tpu.memory_space<vmem>>, vector<16x16xf32>
    tpu.vector_store %arg7[%c0_20, %c0_21], %41 {strides = array<i32>} : memref<16x128xf32, #tpu.memory_space<vmem>>, vector<16x16xf32>,
    %c0_22 = arith.constant 0 : index
    %c16 = arith.constant 16 : index
    %43 = vector.load %arg6[%c0_22, %c16] : memref<16x384xbf16, #tpu.memory_space<vmem>>, vector<16x16xbf16>
    %c0_23 = arith.constant 0 : index
    %c144 = arith.constant 144 : index
    %44 = vector.load %arg6[%c0_23, %c144] : memref<16x384xbf16, #tpu.memory_space<vmem>>, vector<16x16xbf16>
    %c0_24 = arith.constant 0 : index
    %c272 = arith.constant 272 : index
    %45 = vector.load %arg6[%c0_24, %c272] : memref<16x384xbf16, #tpu.memory_space<vmem>>, vector<16x16xbf16>
    %cst_25 = arith.constant dense<0.000000e+00> : vector<16x16xf32>
    %46 = tpu.matmul %43, %44, %cst_25 {dimension_numbers = #tpu.dot_dimension_numbers<[1], [1], [0], [0], [0, 0, 1, 0], [], []>} : vector<16x16xbf16>, vector<16x16xbf16>, vector<16x16xf32> -> vector<16x16xf32>
    %47 = arith.addf %46, %17 : vector<16x16xf32>
    %cst_26 = arith.constant dense<0xFF800000> : vector<16xf32>
    %48 = vector.multi_reduction <maximumf>, %47, %cst_26 [1] : vector<16x16xf32> to vector<16xf32>
    %49 = vector.shape_cast %48 : vector<16xf32> to vector<16x1xf32>
    %50 = vector.broadcast %49 : vector<16x1xf32> to vector<16x16xf32>
    %51 = arith.subf %47, %50 : vector<16x16xf32>
    %52 = math.exp %51 : vector<16x16xf32>
    %cst_27 = arith.constant dense<0.000000e+00> : vector<16xf32>
    %53 = vector.multi_reduction <add>, %52, %cst_27 [1] : vector<16x16xf32> to vector<16xf32>
    %54 = vector.shape_cast %53 : vector<16xf32> to vector<16x1xf32>
    %55 = tpu.reciprocal %54 {approx = true} : vector<16x1xf32> -> vector<16x1xf32>
    %56 = arith.truncf %52 : vector<16x16xf32> to vector<16x16xbf16>
    %cst_28 = arith.constant dense<0.000000e+00> : vector<16x16xf32>
    %57 = tpu.matmul %56, %45, %cst_28 {dimension_numbers = #tpu.dot_dimension_numbers<[1], [0], [0], [1], [0, 0, 1, 1], [], []>} : vector<16x16xbf16>, vector<16x16xbf16>, vector<16x16xf32> -> vector<16x16xf32>
    %58 = vector.broadcast %55 : vector<16x1xf32> to vector<16x16xf32>
    %59 = arith.mulf %57, %58 : vector<16x16xf32>
    %c0_29 = arith.constant 0 : index
    %c16_30 = arith.constant 16 : index
    %60 = vector.load %arg7[%c0_29, %c16_30] : memref<16x128xf32, #tpu.memory_space<vmem>>, vector<16x16xf32>
    tpu.vector_store %arg7[%c0_29, %c16_30], %59 {strides = array<i32>} : memref<16x128xf32, #tpu.memory_space<vmem>>, vector<16x16xf32>,
    %c0_31 = arith.constant 0 : index
    %c32 = arith.constant 32 : index
    %61 = vector.load %arg6[%c0_31, %c32] : memref<16x384xbf16, #tpu.memory_space<vmem>>, vector<16x16xbf16>
    %c0_32 = arith.constant 0 : index
    %c160 = arith.constant 160 : index
    %62 = vector.load %arg6[%c0_32, %c160] : memref<16x384xbf16, #tpu.memory_space<vmem>>, vector<16x16xbf16>
    %c0_33 = arith.constant 0 : index
    %c288 = arith.constant 288 : index
    %63 = vector.load %arg6[%c0_33, %c288] : memref<16x384xbf16, #tpu.memory_space<vmem>>, vector<16x16xbf16>
    %cst_34 = arith.constant dense<0.000000e+00> : vector<16x16xf32>
    %64 = tpu.matmul %61, %62, %cst_34 {dimension_numbers = #tpu.dot_dimension_numbers<[1], [1], [0], [0], [0, 0, 1, 0], [], []>} : vector<16x16xbf16>, vector<16x16xbf16>, vector<16x16xf32> -> vector<16x16xf32>
    %65 = arith.addf %64, %17 : vector<16x16xf32>
    %cst_35 = arith.constant dense<0xFF800000> : vector<16xf32>
    %66 = vector.multi_reduction <maximumf>, %65, %cst_35 [1] : vector<16x16xf32> to vector<16xf32>
    %67 = vector.shape_cast %66 : vector<16xf32> to vector<16x1xf32>
    %68 = vector.broadcast %67 : vector<16x1xf32> to vector<16x16xf32>
    %69 = arith.subf %65, %68 : vector<16x16xf32>
    %70 = math.exp %69 : vector<16x16xf32>
    %cst_36 = arith.constant dense<0.000000e+00> : vector<16xf32>
    %71 = vector.multi_reduction <add>, %70, %cst_36 [1] : vector<16x16xf32> to vector<16xf32>
    %72 = vector.shape_cast %71 : vector<16xf32> to vector<16x1xf32>
    %73 = tpu.reciprocal %72 {approx = true} : vector<16x1xf32> -> vector<16x1xf32>
    %74 = arith.truncf %70 : vector<16x16xf32> to vector<16x16xbf16>
    %cst_37 = arith.constant dense<0.000000e+00> : vector<16x16xf32>
    %75 = tpu.matmul %74, %63, %cst_37 {dimension_numbers = #tpu.dot_dimension_numbers<[1], [0], [0], [1], [0, 0, 1, 1], [], []>} : vector<16x16xbf16>, vector<16x16xbf16>, vector<16x16xf32> -> vector<16x16xf32>
    %76 = vector.broadcast %73 : vector<16x1xf32> to vector<16x16xf32>
    %77 = arith.mulf %75, %76 : vector<16x16xf32>
    %c0_38 = arith.constant 0 : index
    %c32_39 = arith.constant 32 : index
    %78 = vector.load %arg7[%c0_38, %c32_39] : memref<16x128xf32, #tpu.memory_space<vmem>>, vector<16x16xf32>
    tpu.vector_store %arg7[%c0_38, %c32_39], %77 {strides = array<i32>} : memref<16x128xf32, #tpu.memory_space<vmem>>, vector<16x16xf32>,
    %c0_40 = arith.constant 0 : index
    %c48 = arith.constant 48 : index
    %79 = vector.load %arg6[%c0_40, %c48] : memref<16x384xbf16, #tpu.memory_space<vmem>>, vector<16x16xbf16>
    %c0_41 = arith.constant 0 : index
    %c176 = arith.constant 176 : index
    %80 = vector.load %arg6[%c0_41, %c176] : memref<16x384xbf16, #tpu.memory_space<vmem>>, vector<16x16xbf16>
    %c0_42 = arith.constant 0 : index
    %c304 = arith.constant 304 : index
    %81 = vector.load %arg6[%c0_42, %c304] : memref<16x384xbf16, #tpu.memory_space<vmem>>, vector<16x16xbf16>
    %cst_43 = arith.constant dense<0.000000e+00> : vector<16x16xf32>
    %82 = tpu.matmul %79, %80, %cst_43 {dimension_numbers = #tpu.dot_dimension_numbers<[1], [1], [0], [0], [0, 0, 1, 0], [], []>} : vector<16x16xbf16>, vector<16x16xbf16>, vector<16x16xf32> -> vector<16x16xf32>
    %83 = arith.addf %82, %17 : vector<16x16xf32>
    %cst_44 = arith.constant dense<0xFF800000> : vector<16xf32>
    %84 = vector.multi_reduction <maximumf>, %83, %cst_44 [1] : vector<16x16xf32> to vector<16xf32>
    %85 = vector.shape_cast %84 : vector<16xf32> to vector<16x1xf32>
    %86 = vector.broadcast %85 : vector<16x1xf32> to vector<16x16xf32>
    %87 = arith.subf %83, %86 : vector<16x16xf32>
    %88 = math.exp %87 : vector<16x16xf32>
    %cst_45 = arith.constant dense<0.000000e+00> : vector<16xf32>
    %89 = vector.multi_reduction <add>, %88, %cst_45 [1] : vector<16x16xf32> to vector<16xf32>
    %90 = vector.shape_cast %89 : vector<16xf32> to vector<16x1xf32>
    %91 = tpu.reciprocal %90 {approx = true} : vector<16x1xf32> -> vector<16x1xf32>
    %92 = arith.truncf %88 : vector<16x16xf32> to vector<16x16xbf16>
    %cst_46 = arith.constant dense<0.000000e+00> : vector<16x16xf32>
    %93 = tpu.matmul %92, %81, %cst_46 {dimension_numbers = #tpu.dot_dimension_numbers<[1], [0], [0], [1], [0, 0, 1, 1], [], []>} : vector<16x16xbf16>, vector<16x16xbf16>, vector<16x16xf32> -> vector<16x16xf32>
    %94 = vector.broadcast %91 : vector<16x1xf32> to vector<16x16xf32>
    %95 = arith.mulf %93, %94 : vector<16x16xf32>
    %c0_47 = arith.constant 0 : index
    %c48_48 = arith.constant 48 : index
    %96 = vector.load %arg7[%c0_47, %c48_48] : memref<16x128xf32, #tpu.memory_space<vmem>>, vector<16x16xf32>
    tpu.vector_store %arg7[%c0_47, %c48_48], %95 {strides = array<i32>} : memref<16x128xf32, #tpu.memory_space<vmem>>, vector<16x16xf32>,
    %c0_49 = arith.constant 0 : index
    %c64 = arith.constant 64 : index
    %97 = vector.load %arg6[%c0_49, %c64] : memref<16x384xbf16, #tpu.memory_space<vmem>>, vector<16x16xbf16>
    %c0_50 = arith.constant 0 : index
    %c192 = arith.constant 192 : index
    %98 = vector.load %arg6[%c0_50, %c192] : memref<16x384xbf16, #tpu.memory_space<vmem>>, vector<16x16xbf16>
    %c0_51 = arith.constant 0 : index
    %c320 = arith.constant 320 : index
    %99 = vector.load %arg6[%c0_51, %c320] : memref<16x384xbf16, #tpu.memory_space<vmem>>, vector<16x16xbf16>
    %cst_52 = arith.constant dense<0.000000e+00> : vector<16x16xf32>
    %100 = tpu.matmul %97, %98, %cst_52 {dimension_numbers = #tpu.dot_dimension_numbers<[1], [1], [0], [0], [0, 0, 1, 0], [], []>} : vector<16x16xbf16>, vector<16x16xbf16>, vector<16x16xf32> -> vector<16x16xf32>
    %101 = arith.addf %100, %17 : vector<16x16xf32>
    %cst_53 = arith.constant dense<0xFF800000> : vector<16xf32>
    %102 = vector.multi_reduction <maximumf>, %101, %cst_53 [1] : vector<16x16xf32> to vector<16xf32>
    %103 = vector.shape_cast %102 : vector<16xf32> to vector<16x1xf32>
    %104 = vector.broadcast %103 : vector<16x1xf32> to vector<16x16xf32>
    %105 = arith.subf %101, %104 : vector<16x16xf32>
    %106 = math.exp %105 : vector<16x16xf32>
    %cst_54 = arith.constant dense<0.000000e+00> : vector<16xf32>
    %107 = vector.multi_reduction <add>, %106, %cst_54 [1] : vector<16x16xf32> to vector<16xf32>
    %108 = vector.shape_cast %107 : vector<16xf32> to vector<16x1xf32>
    %109 = tpu.reciprocal %108 {approx = true} : vector<16x1xf32> -> vector<16x1xf32>
    %110 = arith.truncf %106 : vector<16x16xf32> to vector<16x16xbf16>
    %cst_55 = arith.constant dense<0.000000e+00> : vector<16x16xf32>
    %111 = tpu.matmul %110, %99, %cst_55 {dimension_numbers = #tpu.dot_dimension_numbers<[1], [0], [0], [1], [0, 0, 1, 1], [], []>} : vector<16x16xbf16>, vector<16x16xbf16>, vector<16x16xf32> -> vector<16x16xf32>
    %112 = vector.broadcast %109 : vector<16x1xf32> to vector<16x16xf32>
    %113 = arith.mulf %111, %112 : vector<16x16xf32>
    %c0_56 = arith.constant 0 : index
    %c64_57 = arith.constant 64 : index
    %114 = vector.load %arg7[%c0_56, %c64_57] : memref<16x128xf32, #tpu.memory_space<vmem>>, vector<16x16xf32>
    tpu.vector_store %arg7[%c0_56, %c64_57], %113 {strides = array<i32>} : memref<16x128xf32, #tpu.memory_space<vmem>>, vector<16x16xf32>,
    %c0_58 = arith.constant 0 : index
    %c80 = arith.constant 80 : index
    %115 = vector.load %arg6[%c0_58, %c80] : memref<16x384xbf16, #tpu.memory_space<vmem>>, vector<16x16xbf16>
    %c0_59 = arith.constant 0 : index
    %c208 = arith.constant 208 : index
    %116 = vector.load %arg6[%c0_59, %c208] : memref<16x384xbf16, #tpu.memory_space<vmem>>, vector<16x16xbf16>
    %c0_60 = arith.constant 0 : index
    %c336 = arith.constant 336 : index
    %117 = vector.load %arg6[%c0_60, %c336] : memref<16x384xbf16, #tpu.memory_space<vmem>>, vector<16x16xbf16>
    %cst_61 = arith.constant dense<0.000000e+00> : vector<16x16xf32>
    %118 = tpu.matmul %115, %116, %cst_61 {dimension_numbers = #tpu.dot_dimension_numbers<[1], [1], [0], [0], [0, 0, 1, 0], [], []>} : vector<16x16xbf16>, vector<16x16xbf16>, vector<16x16xf32> -> vector<16x16xf32>
    %119 = arith.addf %118, %17 : vector<16x16xf32>
    %cst_62 = arith.constant dense<0xFF800000> : vector<16xf32>
    %120 = vector.multi_reduction <maximumf>, %119, %cst_62 [1] : vector<16x16xf32> to vector<16xf32>
    %121 = vector.shape_cast %120 : vector<16xf32> to vector<16x1xf32>
    %122 = vector.broadcast %121 : vector<16x1xf32> to vector<16x16xf32>
    %123 = arith.subf %119, %122 : vector<16x16xf32>
    %124 = math.exp %123 : vector<16x16xf32>
    %cst_63 = arith.constant dense<0.000000e+00> : vector<16xf32>
    %125 = vector.multi_reduction <add>, %124, %cst_63 [1] : vector<16x16xf32> to vector<16xf32>
    %126 = vector.shape_cast %125 : vector<16xf32> to vector<16x1xf32>
    %127 = tpu.reciprocal %126 {approx = true} : vector<16x1xf32> -> vector<16x1xf32>
    %128 = arith.truncf %124 : vector<16x16xf32> to vector<16x16xbf16>
    %cst_64 = arith.constant dense<0.000000e+00> : vector<16x16xf32>
    %129 = tpu.matmul %128, %117, %cst_64 {dimension_numbers = #tpu.dot_dimension_numbers<[1], [0], [0], [1], [0, 0, 1, 1], [], []>} : vector<16x16xbf16>, vector<16x16xbf16>, vector<16x16xf32> -> vector<16x16xf32>
    %130 = vector.broadcast %127 : vector<16x1xf32> to vector<16x16xf32>
    %131 = arith.mulf %129, %130 : vector<16x16xf32>
    %c0_65 = arith.constant 0 : index
    %c80_66 = arith.constant 80 : index
    %132 = vector.load %arg7[%c0_65, %c80_66] : memref<16x128xf32, #tpu.memory_space<vmem>>, vector<16x16xf32>
    tpu.vector_store %arg7[%c0_65, %c80_66], %131 {strides = array<i32>} : memref<16x128xf32, #tpu.memory_space<vmem>>, vector<16x16xf32>,
    %c0_67 = arith.constant 0 : index
    %c96 = arith.constant 96 : index
    %133 = vector.load %arg6[%c0_67, %c96] : memref<16x384xbf16, #tpu.memory_space<vmem>>, vector<16x16xbf16>
    %c0_68 = arith.constant 0 : index
    %c224 = arith.constant 224 : index
    %134 = vector.load %arg6[%c0_68, %c224] : memref<16x384xbf16, #tpu.memory_space<vmem>>, vector<16x16xbf16>
    %c0_69 = arith.constant 0 : index
    %c352 = arith.constant 352 : index
    %135 = vector.load %arg6[%c0_69, %c352] : memref<16x384xbf16, #tpu.memory_space<vmem>>, vector<16x16xbf16>
    %cst_70 = arith.constant dense<0.000000e+00> : vector<16x16xf32>
    %136 = tpu.matmul %133, %134, %cst_70 {dimension_numbers = #tpu.dot_dimension_numbers<[1], [1], [0], [0], [0, 0, 1, 0], [], []>} : vector<16x16xbf16>, vector<16x16xbf16>, vector<16x16xf32> -> vector<16x16xf32>
    %137 = arith.addf %136, %17 : vector<16x16xf32>
    %cst_71 = arith.constant dense<0xFF800000> : vector<16xf32>
    %138 = vector.multi_reduction <maximumf>, %137, %cst_71 [1] : vector<16x16xf32> to vector<16xf32>
    %139 = vector.shape_cast %138 : vector<16xf32> to vector<16x1xf32>
    %140 = vector.broadcast %139 : vector<16x1xf32> to vector<16x16xf32>
    %141 = arith.subf %137, %140 : vector<16x16xf32>
    %142 = math.exp %141 : vector<16x16xf32>
    %cst_72 = arith.constant dense<0.000000e+00> : vector<16xf32>
    %143 = vector.multi_reduction <add>, %142, %cst_72 [1] : vector<16x16xf32> to vector<16xf32>
    %144 = vector.shape_cast %143 : vector<16xf32> to vector<16x1xf32>
    %145 = tpu.reciprocal %144 {approx = true} : vector<16x1xf32> -> vector<16x1xf32>
    %146 = arith.truncf %142 : vector<16x16xf32> to vector<16x16xbf16>
    %cst_73 = arith.constant dense<0.000000e+00> : vector<16x16xf32>
    %147 = tpu.matmul %146, %135, %cst_73 {dimension_numbers = #tpu.dot_dimension_numbers<[1], [0], [0], [1], [0, 0, 1, 1], [], []>} : vector<16x16xbf16>, vector<16x16xbf16>, vector<16x16xf32> -> vector<16x16xf32>
    %148 = vector.broadcast %145 : vector<16x1xf32> to vector<16x16xf32>
    %149 = arith.mulf %147, %148 : vector<16x16xf32>
    %c0_74 = arith.constant 0 : index
    %c96_75 = arith.constant 96 : index
    %150 = vector.load %arg7[%c0_74, %c96_75] : memref<16x128xf32, #tpu.memory_space<vmem>>, vector<16x16xf32>
    tpu.vector_store %arg7[%c0_74, %c96_75], %149 {strides = array<i32>} : memref<16x128xf32, #tpu.memory_space<vmem>>, vector<16x16xf32>,
    %c0_76 = arith.constant 0 : index
    %c112 = arith.constant 112 : index
    %151 = vector.load %arg6[%c0_76, %c112] : memref<16x384xbf16, #tpu.memory_space<vmem>>, vector<16x16xbf16>
    %c0_77 = arith.constant 0 : index
    %c240 = arith.constant 240 : index
    %152 = vector.load %arg6[%c0_77, %c240] : memref<16x384xbf16, #tpu.memory_space<vmem>>, vector<16x16xbf16>
    %c0_78 = arith.constant 0 : index
    %c368 = arith.constant 368 : index
    %153 = vector.load %arg6[%c0_78, %c368] : memref<16x384xbf16, #tpu.memory_space<vmem>>, vector<16x16xbf16>
    %cst_79 = arith.constant dense<0.000000e+00> : vector<16x16xf32>
    %154 = tpu.matmul %151, %152, %cst_79 {dimension_numbers = #tpu.dot_dimension_numbers<[1], [1], [0], [0], [0, 0, 1, 0], [], []>} : vector<16x16xbf16>, vector<16x16xbf16>, vector<16x16xf32> -> vector<16x16xf32>
    %155 = arith.addf %154, %17 : vector<16x16xf32>
    %cst_80 = arith.constant dense<0xFF800000> : vector<16xf32>
    %156 = vector.multi_reduction <maximumf>, %155, %cst_80 [1] : vector<16x16xf32> to vector<16xf32>
    %157 = vector.shape_cast %156 : vector<16xf32> to vector<16x1xf32>
    %158 = vector.broadcast %157 : vector<16x1xf32> to vector<16x16xf32>
    %159 = arith.subf %155, %158 : vector<16x16xf32>
    %160 = math.exp %159 : vector<16x16xf32>
    %cst_81 = arith.constant dense<0.000000e+00> : vector<16xf32>
    %161 = vector.multi_reduction <add>, %160, %cst_81 [1] : vector<16x16xf32> to vector<16xf32>
    %162 = vector.shape_cast %161 : vector<16xf32> to vector<16x1xf32>
    %163 = tpu.reciprocal %162 {approx = true} : vector<16x1xf32> -> vector<16x1xf32>
    %164 = arith.truncf %160 : vector<16x16xf32> to vector<16x16xbf16>
    %cst_82 = arith.constant dense<0.000000e+00> : vector<16x16xf32>
    %165 = tpu.matmul %164, %153, %cst_82 {dimension_numbers = #tpu.dot_dimension_numbers<[1], [0], [0], [1], [0, 0, 1, 1], [], []>} : vector<16x16xbf16>, vector<16x16xbf16>, vector<16x16xf32> -> vector<16x16xf32>
    %166 = vector.broadcast %163 : vector<16x1xf32> to vector<16x16xf32>
    %167 = arith.mulf %165, %166 : vector<16x16xf32>
    %c0_83 = arith.constant 0 : index
    %c112_84 = arith.constant 112 : index
    %168 = vector.load %arg7[%c0_83, %c112_84] : memref<16x128xf32, #tpu.memory_space<vmem>>, vector<16x16xf32>
    tpu.vector_store %arg7[%c0_83, %c112_84], %167 {strides = array<i32>} : memref<16x128xf32, #tpu.memory_space<vmem>>, vector<16x16xf32>,
    %c0_85 = arith.constant 0 : index
    %c0_86 = arith.constant 0 : index
    %169 = vector.load %arg7[%c0_85, %c0_86] : memref<16x128xf32, #tpu.memory_space<vmem>>, vector<16x128xf32>
    %170 = arith.truncf %169 : vector<16x128xf32> to vector<16x128xbf16>
    %c0_87 = arith.constant 0 : index
    %c0_88 = arith.constant 0 : index
    %171 = vector.load %arg3[%c0_87, %c0_88] : memref<128x32xbf16, #tpu.memory_space<vmem>>, vector<128x32xbf16>
    %cst_89 = arith.constant dense<0.000000e+00> : vector<16x32xf32>
    %172 = tpu.matmul %170, %171, %cst_89 {dimension_numbers = #tpu.dot_dimension_numbers<[1], [0], [0], [1], [0, 0, 1, 1], [], []>} : vector<16x128xbf16>, vector<128x32xbf16>, vector<16x32xf32> -> vector<16x32xf32>
    %c0_90 = arith.constant 0 : index
    %c0_91 = arith.constant 0 : index
    %173 = vector.load %arg4[%c0_90, %c0_91] : memref<1x32xf32, #tpu.memory_space<vmem>>, vector<1x32xf32>
    %174 = vector.broadcast %173 : vector<1x32xf32> to vector<16x32xf32>
    %175 = arith.addf %172, %174 : vector<16x32xf32>
    %176 = vector.shape_cast %175 : vector<16x32xf32> to vector<2x8x32xf32>
    %c0_92 = arith.constant 0 : index
    %c0_93 = arith.constant 0 : index
    %c0_94 = arith.constant 0 : index
    %177 = vector.load %arg5[%c0_92, %c0_93, %c0_94] : memref<2x8x32xf32, #tpu.memory_space<vmem>>, vector<2x8x32xf32>
    tpu.vector_store %arg5[%c0_92, %c0_93, %c0_94], %176 {strides = array<i32>} : memref<2x8x32xf32, #tpu.memory_space<vmem>>, vector<2x8x32xf32>,
    return
  }
  func.func @transform_0(%arg0: i32) -> (i32, i32, i32) {
    %c0_i32 = arith.constant 0 : i32
    %c0_i32_0 = arith.constant 0 : i32
    %c0_i32_1 = arith.constant 0 : i32
    return %arg0, %c0_i32, %c0_i32_0 : i32, i32, i32
  }
  func.func @transform_1(%arg0: i32) -> (i32, i32) {
    %c0_i32 = arith.constant 0 : i32
    %c0_i32_0 = arith.constant 0 : i32
    %c0_i32_1 = arith.constant 0 : i32
    return %c0_i32, %c0_i32_0 : i32, i32
  }
  func.func @transform_2(%arg0: i32) -> (i32, i32) {
    %c0_i32 = arith.constant 0 : i32
    %c0_i32_0 = arith.constant 0 : i32
    %c0_i32_1 = arith.constant 0 : i32
    return %c0_i32, %c0_i32_0 : i32, i32
  }
  func.func @transform_3(%arg0: i32) -> (i32, i32) {
    %c0_i32 = arith.constant 0 : i32
    %c0_i32_0 = arith.constant 0 : i32
    %c0_i32_1 = arith.constant 0 : i32
    return %c0_i32, %c0_i32_0 : i32, i32
  }
  func.func @transform_4(%arg0: i32) -> (i32, i32, i32) {
    %c0_i32 = arith.constant 0 : i32
    %c0_i32_0 = arith.constant 0 : i32
    %c0_i32_1 = arith.constant 0 : i32
    return %arg0, %c0_i32, %c0_i32_0 : i32, i32, i32
  }
}

</mosaic_0001>

<bundles_post_ra>
// kernel: tpu_custom_call.1
= control target key start
LH: loop header
LB: loop body
LE: loop exit
PB: predicated region body
PF: predicated region fallthrough
CT: control target
= control target key end

     0   :  { %v1715_v2 = vmov 0   ;;  %v1716_v6 = vmov 0.0   ;;  %vm1717_vm0 = vmmov 0   ;;  %vm83_vm1 = vcmask 261120   ;;  %s2094_s0 = inlined_call_operand.vmem [shape: f32[2,8,32], index: 0, kind: input, shape index: {}]   ;;  %s2095_s1 = inlined_call_operand.vmem [shape: bf16[32,384], index: 1, kind: input, shape index: {}]   ;;  %s2096_s2 = inlined_call_operand.vmem [shape: bf16[128,32], index: 2, kind: input, shape index: {}]   ;;  %s2097_s3 = inlined_call_operand.vmem [shape: f32[1,32], index: 3, kind: input, shape index: {}]   ;;  %s2098_s4 = inlined_call_operand.hbm [shape: f32[2,8,32], index: 4, kind: output, shape index: {}]  }
   0x1   :  { %v1611_v0 = vld [vmem:[%s2095_s1 + $0x4] ss:$12 sps:$4 sm:$0xff]   ;;  %v1613_v1 = vld [vmem:[%s2095_s1] ss:$12 sps:$4 sm:$0xff]   ;;  %119 = vmatprep.mubr.bf16.mxu1 %v1715_v2  ;;  %v1614_v3 = vld [vmem:[%s2095_s1 + $0x1c] ss:$12 sps:$4 sm:$0xff]   ;;  %1493 = vmatprep.subr.bf16.mxu0 %v1716_v6 }
   0x2   :  { %87 = vmatprep.subr.bf16.mxu1 %v1611_v0  ;;  %v1616_v4 = vld [vmem:[%s2095_s1 + $0x18] ss:$12 sps:$4 sm:$0xff]   ;;  %v41_v7 = vld [vmem:[%s2094_s0 + $0x8] sm:$0xff]  ;;  %1495 = vmatprep.mubr.msk.bf16.mxu0 %vm1717_vm0, %v1716_v6 }
   0x3   :  { %v40_v5 = vld [vmem:[%s2094_s0] sm:$0xff]  ;;  %88 = vmatpush1.bf16.msra.mxu1 %v1613_v1  ;;  %v1617_v8 = vld [vmem:[%s2095_s1 + $0x8] ss:$12 sps:$4 sm:$0xff]  }
   0x4   :  { %89 = vmatprep.subr.bf16.mxu1 %v1614_v3  ;;  %v42_v9 = vpack.c.bf16 %v41_v7, %v40_v5 }
   0x7   :  { %90 = vmatpush1.bf16.msra.mxu1 %v1616_v4 }
   0x8   :  { %1473 = vmatprep.subr.bf16.mxu1 %v1716_v6 }
   0xa   :  { %1402 = vmatmul.mubr.msk.bf16.vlgmr.msra.gmra.mrb[0].mxu1 %vm83_vm1, %v42_v9 }
   0xb   :  { %9 = vsyncpa [#allocation5], 0  ;;  %1474 = vmatpush3.bf16.msra.mxu1 %v1617_v8  ;;  %v1618_v10 = vld [vmem:[%s2095_s1 + $0x20] ss:$12 sps:$4 sm:$0xff]   ;;  %1477 = vmatprep.mubr.msk.bf16.mxu1 %vm1717_vm0, %v1716_v6  ;;  %vm180_vm2 = vcmask 130048   ;;  %s1718_s1 = smov 96   ;;  %v19_v44 = vlaneseq }
   0xc   :  { %1475 = vmatprep.subr.bf16.mxu1 %v1716_v6  ;;  %s1719_s30 = smov 112   ;;  %s1720_s5 = smov 80   ;;  %v1725_v60 = vmov -1e+30   ;;  %vm432_vm5 = vcmask 261248   ;;  %vm570_vm6 = vcmask 392448  }
   0xd   :  { %s1721_s6 = smov 64   ;;  %s1722_s7 = smov 48   ;;  %v20_v45 = vshrl.u32 %v19_v44, 7  ;;  %v25_v46 = vand.u32 127, %v19_v44  ;;  %vm708_vm7 = vcmask 523648   ;;  %vm846_vm8 = vcmask 654848  }
   0xe   :  { %s1723_s8 = smov 32   ;;  %s1724_s9 = smov 16   ;;  %vm984_vm9 = vcmask 786048   ;;  %vm1122_vm10 = vcmask 917248   ;;  %vm1260_vm11 = vcmask 1048448  }
   0xf   :  { %1476 = vmatpush3.bf16.msra.mxu1 %v1618_v10  ;;  %v21_v47 = vadd.s32 8, %v20_v45  ;;  %v22_v48 = vcvt.s32.f32 %v20_v45  ;;  %v26_v49 = vcvt.s32.f32 %v25_v46  ;;  %s1726_s27 = smov [#allocation4]  }
  0x10   :  { %1481 = vmatprep.subr.bf16.mxu1 %v1716_v6  ;;  %s1385_s28 = sshll.u32 %s1726_s27, 4  ;;  %s1386_s28 = int_to_ptr.vmem [resolvable:$true] %s1385_s28 }
  0x11   :  { %v23_v50 = vcvt.s32.f32 %v21_v47  ;;  %v27_v51 = vadd.f32 0.5, %v22_v48  ;;  %v33_v52 = vadd.f32 0.5, %v26_v49  ;;  %s1691_s29 = scalar_lea.vmem %s1386_s28, 256  ;;  %p1696_p1 = scmp.lt.s32.totalorder %s1386_s28, %s1386_s28 }
  0x12   :  { %1478 = vmatmul.mubr.msk.bf16.vlgmr.msra.gmra.mrb[4].mxu1 %vm83_vm1, %v42_v9  ;;  %p1692_p0 = scmp.ne.s32.totalorder %s1386_s28, %s1691_s29  ;;  %p1697_p2 = scmp.lt.s32.totalorder %s1691_s29, %s1691_s29 }
  0x13   :  { %1483 = vmatprep.mubr.msk.bf16.mxu1 %vm1717_vm0, %v1716_v6  ;;  %v28_v53 = vadd.f32 0.5, %v23_v50  ;;  %v29_v54 = vmul.f32 0.125, %v27_v51  ;;  %v34_v55 = vmul.f32 0.125, %v33_v52 }
  0x14   :  { %p1698_p3 = por %p1697_p2, %p1696_p1 }
  0x15   :  { %v30_v56 = vmul.f32 0.125, %v28_v53  ;;  %v31_v57 = vfloor.f32 %v29_v54  ;;  %v35_v58 = vfloor.f32 %v34_v55 }
  0x16   :  { %p1699_p4 = pnand %p1698_p3, %p1692_p0 }
  0x17   :  { %v32_v59 = vfloor.f32 %v30_v56  ;;  %vm36_vm3 = vcmp.eq.f32.partialorder %v31_v57, %v35_v58 }
  0x18   :  { %v1854_v61 = vsel %vm36_vm3, 0.0, %v1725_v60 }
  0x19   :  { %vm37_vm4 = vcmp.eq.f32.partialorder %v32_v59, %v35_v58 }
  0x1a   :  { %v1856_v63 = vsel %vm37_vm4, 0.0, %v1725_v60 }
  0xdd   :  { %v121_v11 = vpop.f32.mrb[0].mxu1 }
  0xde   :  { %v123_v12 = vpop.f32.mrb[1].mxu1 }
  0xdf   :  { %v125_v13 = vpop.f32.mrb[2].mxu1 }
  0xe0   :  { %v171_v14 = vpack.c.bf16 %v125_v13, %v121_v11  ;;  %v127_v15 = vpop.f32.mrb[3].mxu1 }
  0xe1   :  { %v172_v16 = vpack.c.bf16 %v127_v15, %v123_v12 }
  0xe3   :  { %442 = vrot.lane.b32.xlu1 %v172_v16, %s1718_s1  ;;  %304 = vrot.lane.b32.xlu0 %v172_v16, %s1719_s30  ;;  %v185_v17 = vsel %vm180_vm2, %v172_v16, 0 }
  0xe4   :  { %1482 = vmatpush3.bf16.xpose.msra.mxu1 %v185_v17 }
  0xe5   :  { %1487 = vmatprep.subr.bf16.mxu1 %v1716_v6  ;;  %v164_v18 = vpop.f32.mrb[4].mxu1 }
  0xe6   :  { %v1479_v19 = vpop.f32.mrb[5].mxu1 }
  0xe7   :  { %439 = vrot.lane.b32.xlu1 %v171_v14, %s1718_s1  ;;  %301 = vrot.lane.b32.xlu0 %v171_v14, %s1719_s30  ;;  %v167_v20 = vpop.f32.mrb[6].mxu1 }
  0xe8   :  { %v1809_v21 = vpack.c.bf16 %v167_v20, %v164_v18  ;;  %v1480_v22 = vpop.f32.mrb[7].mxu1 }
  0xeb   :  { %577 = vrot.lane.b32.xlu1 %v171_v14, %s1720_s5  ;;  %580 = vrot.lane.b32.xlu0 %v172_v16, %s1720_s5 }
  0xec   :  { %1484 = vmatmul.mubr.msk.bf16.vlgmr.msra.gmra.mrb[8].mxu1 %vm180_vm2, %v171_v14 }
  0xed   :  { %1489 = vmatprep.mubr.msk.bf16.mxu1 %vm1717_vm0, %v1716_v6  ;;  %1488 = vmatpush3.bf16.msra.mxu1 %v1809_v21 }
  0xee   :  { %1499 = vmatprep.subr.bf16.mxu1 %v1716_v6 }
  0xef   :  { %715 = vrot.lane.b32.xlu1 %v171_v14, %s1721_s6  ;;  %718 = vrot.lane.b32.xlu0 %v172_v16, %s1721_s6 }
  0xf3   :  { %853 = vrot.lane.b32.xlu1 %v171_v14, %s1722_s7  ;;  %856 = vrot.lane.b32.xlu0 %v172_v16, %s1722_s7 }
  0xf7   :  { %991 = vrot.lane.b32.xlu1 %v171_v14, %s1723_s8  ;;  %994 = vrot.lane.b32.xlu0 %v172_v16, %s1723_s8 }
  0xfb   :  { %1129 = vrot.lane.b32.xlu1 %v171_v14, %s1724_s9  ;;  %1132 = vrot.lane.b32.xlu0 %v172_v16, %s1724_s9 }
  0xff   :  { %375 = vrot.lane.b32.xlu1 %v1809_v21, %s1719_s30  ;;  %513 = vrot.lane.b32.xlu0 %v1809_v21, %s1718_s1 }
 0x103   :  { %651 = vrot.lane.b32.xlu1 %v1809_v21, %s1720_s5 }
 0x155   :  { %v305_v23 = vpop.permute.xlu0 %304  ;;  %v443_v25 = vpop.permute.xlu1 %442 }
 0x156   :  { %v310_v24 = vsel %vm180_vm2, %v305_v23, 0  ;;  %v448_v27 = vsel %vm180_vm2, %v443_v25, 0 }
 0x157   :  { %1494 = vmatpush3.bf16.xpose.msra.mxu0 %v310_v24 }
 0x158   :  { %1505 = vmatprep.subr.bf16.mxu0 %v1716_v6 }
 0x159   :  { %v302_v26 = vpop.permute.xlu0 %301  ;;  %v440_v29 = vpop.permute.xlu1 %439 }
 0x15d   :  { %v581_v28 = vpop.permute.xlu0 %580  ;;  %v578_v32 = vpop.permute.xlu1 %577 }
 0x15e   :  { %1496 = vmatmul.mubr.msk.bf16.vlgmr.msra.gmra.mrb[0].mxu0 %vm180_vm2, %v302_v26  ;;  %v586_v30 = vsel %vm180_vm2, %v581_v28, 0 }
 0x15f   :  { %1506 = vmatpush3.bf16.xpose.msra.mxu0 %v448_v27  ;;  %1507 = vmatprep.mubr.msk.bf16.mxu0 %vm1717_vm0, %v1716_v6 }
 0x160   :  { %1517 = vmatprep.subr.bf16.mxu0 %v1716_v6 }
 0x161   :  { %v719_v31 = vpop.permute.xlu0 %718  ;;  %v716_v35 = vpop.permute.xlu1 %715 }
 0x162   :  { %v724_v33 = vsel %vm180_vm2, %v719_v31, 0 }
 0x165   :  { %v857_v34 = vpop.permute.xlu0 %856  ;;  %v854_v38 = vpop.permute.xlu1 %853 }
 0x166   :  { %1508 = vmatmul.mubr.msk.bf16.vlgmr.msra.gmra.mrb[4].mxu0 %vm180_vm2, %v440_v29  ;;  %v862_v36 = vsel %vm180_vm2, %v857_v34, 0 }
 0x167   :  { %1518 = vmatpush3.bf16.xpose.msra.mxu0 %v586_v30  ;;  %1519 = vmatprep.mubr.msk.bf16.mxu0 %vm1717_vm0, %v1716_v6 }
 0x168   :  { %1529 = vmatprep.subr.bf16.mxu0 %v1716_v6 }
 0x169   :  { %v995_v37 = vpop.permute.xlu0 %994  ;;  %v992_v41 = vpop.permute.xlu1 %991 }
 0x16a   :  { %v1000_v39 = vsel %vm180_vm2, %v995_v37, 0 }
 0x16d   :  { %v1133_v40 = vpop.permute.xlu0 %1132  ;;  %v1130_v43 = vpop.permute.xlu1 %1129 }
 0x16e   :  { %1520 = vmatmul.mubr.msk.bf16.vlgmr.msra.gmra.mrb[8].mxu0 %vm180_vm2, %v578_v32  ;;  %v1138_v42 = vsel %vm180_vm2, %v1133_v40, 0 }
 0x16f   :  { %1530 = vmatpush3.bf16.xpose.msra.mxu0 %v724_v33  ;;  %1531 = vmatprep.mubr.msk.bf16.mxu0 %vm1717_vm0, %v1716_v6 }
 0x170   :  { %1541 = vmatprep.subr.bf16.mxu0 %v1716_v6 }
 0x171   :  { %v376_v33 = vpop.permute.xlu1 %375  ;;  %v1895_v37 = vpop.permute.xlu0 %513 }
 0x176   :  { %1532 = vmatmul.mubr.msk.bf16.vlgmr.msra.gmra.mrb[12].mxu0 %vm180_vm2, %v716_v35 }
 0x177   :  { %1542 = vmatpush3.bf16.xpose.msra.mxu0 %v862_v36  ;;  %1543 = vmatprep.mubr.msk.bf16.mxu0 %vm1717_vm0, %v1716_v6 }
 0x178   :  { %1553 = vmatprep.subr.bf16.mxu0 %v1716_v6 }
 0x17e   :  { %1544 = vmatmul.mubr.msk.bf16.vlgmr.msra.gmra.mrb[16].mxu0 %vm180_vm2, %v854_v38 }
 0x17f   :  { %1554 = vmatpush3.bf16.xpose.msra.mxu0 %v1000_v39  ;;  %1555 = vmatprep.mubr.msk.bf16.mxu0 %vm1717_vm0, %v1716_v6 }
 0x180   :  { %1565 = vmatprep.subr.bf16.mxu0 %v1716_v6 }
 0x186   :  { %1556 = vmatmul.mubr.msk.bf16.vlgmr.msra.gmra.mrb[20].mxu0 %vm180_vm2, %v992_v41  ;;  %v1900_v41 = vpop.permute.xlu1 %651 }
 0x187   :  { %1566 = vmatpush3.bf16.xpose.msra.mxu0 %v1138_v42  ;;  %1567 = vmatprep.mubr.msk.bf16.mxu0 %vm1717_vm0, %v1716_v6 }
 0x188   :  { %1577 = vmatprep.subr.bf16.mxu0 %v1716_v6 }
 0x18e   :  { %1568 = vmatmul.mubr.msk.bf16.vlgmr.msra.gmra.mrb[24].mxu0 %vm180_vm2, %v1130_v43 }
 0x18f   :  { %1593 = vmatprep.mubr.msk.bf16.mxu0 %vm1717_vm0, %v1716_v6 }
 0x1bf   :  { %v221_v62 = vpop.f32.mrb[8].mxu1 }
 0x1c0   :  { %v222_v0 = vadd.f32 %v221_v62, %v1854_v61  ;;  %v1485_v1 = vpop.f32.mrb[9].mxu1 }
 0x1c1   :  { %v224_v2 = vpop.f32.mrb[10].mxu1 }
 0x1c2   :  { %v225_v3 = vadd.f32 %v224_v2, %v1856_v63  ;;  %v1486_v4 = vpop.f32.mrb[11].mxu1  ;;  %v228_v5 = vsel %vm180_vm2, %v222_v0, -inf }
 0x1c3   :  { %229 = vmax.xlane.f32.xlu0 %v228_v5 }
 0x1c4   :  { %v231_v7 = vsel %vm180_vm2, %v225_v3, -inf }
 0x1c5   :  { %232 = vmax.xlane.f32.xlu1 %v231_v7 }
 0x231   :  { %v346_v8 = vpop.f32.mrb[0].mxu0 }
 0x232   :  { %v1863_v9 = vadd.f32 %v346_v8, %v1854_v61  ;;  %v1497_v10 = vpop.f32.mrb[1].mxu0 }
 0x233   :  { %v349_v11 = vpop.f32.mrb[2].mxu0 }
 0x234   :  { %v1866_v12 = vadd.f32 %v349_v11, %v1856_v63  ;;  %v1498_v13 = vpop.f32.mrb[3].mxu0  ;;  %v353_v14 = vsel %vm180_vm2, %v1863_v9, -inf }
 0x235   :  { %354 = vmax.xlane.f32.xlu0 %v353_v14 }
 0x236   :  { %v356_v15 = vsel %vm180_vm2, %v1866_v12, -inf }
 0x239   :  { %v484_v16 = vpop.f32.mrb[4].mxu0  ;;  %357 = vmax.xlane.f32.xlu0 %v356_v15 }
 0x23a   :  { %v1873_v17 = vadd.f32 %v484_v16, %v1854_v61  ;;  %v1509_v18 = vpop.f32.mrb[5].mxu0 }
 0x23b   :  { %v487_v19 = vpop.f32.mrb[6].mxu0 }
 0x23c   :  { %v1876_v20 = vadd.f32 %v487_v19, %v1856_v63  ;;  %v1510_v22 = vpop.f32.mrb[7].mxu0  ;;  %v491_v23 = vsel %vm180_vm2, %v1873_v17, -inf }
 0x23d   :  { %492 = vmax.xlane.f32.xlu1 %v491_v23 }
 0x23e   :  { %v494_v24 = vsel %vm180_vm2, %v1876_v20, -inf }
 0x23f   :  { %495 = vmax.xlane.f32.xlu0 %v494_v24 }
 0x241   :  { %v622_v25 = vpop.f32.mrb[8].mxu0 }
 0x242   :  { %v1883_v26 = vadd.f32 %v622_v25, %v1854_v61  ;;  %v1521_v27 = vpop.f32.mrb[9].mxu0 }
 0x243   :  { %v625_v28 = vpop.f32.mrb[10].mxu0 }
 0x244   :  { %v1886_v29 = vadd.f32 %v625_v28, %v1856_v63  ;;  %v1522_v30 = vpop.f32.mrb[11].mxu0  ;;  %v629_v31 = vsel %vm180_vm2, %v1883_v26, -inf }
 0x245   :  { %630 = vmax.xlane.f32.xlu1 %v629_v31 }
 0x246   :  { %v632_v32 = vsel %vm180_vm2, %v1886_v29, -inf }
 0x247   :  { %633 = vmax.xlane.f32.xlu0 %v632_v32 }
 0x249   :  { %v760_v34 = vpop.f32.mrb[12].mxu0 }
 0x24a   :  { %v1893_v35 = vadd.f32 %v760_v34, %v1854_v61  ;;  %v1533_v36 = vpop.f32.mrb[13].mxu0 }
 0x24b   :  { %v763_v38 = vpop.f32.mrb[14].mxu0 }
 0x24c   :  { %v1898_v39 = vadd.f32 %v763_v38, %v1856_v63  ;;  %v1534_v40 = vpop.f32.mrb[15].mxu0  ;;  %v767_v42 = vsel %vm180_vm2, %v1893_v35, -inf }
 0x24d   :  { %768 = vmax.xlane.f32.xlu1 %v767_v42 }
 0x24e   :  { %v770_v43 = vsel %vm180_vm2, %v1898_v39, -inf }
 0x24f   :  { %771 = vmax.xlane.f32.xlu0 %v770_v43 }
 0x250   :  { %v230_v44 = vpop.xlane.xlu0 %229 }
 0x251   :  { %v234_v45 = vsub.f32 %v222_v0, %v230_v44  ;;  %v898_v46 = vpop.f32.mrb[16].mxu0 }
 0x252   :  { %v1907_v47 = vadd.f32 %v898_v46, %v1854_v61  ;;  %v233_v48 = vpop.xlane.xlu1 %232  ;;  %v1545_v49 = vpop.f32.mrb[17].mxu0 }
 0x253   :  { %v236_v50 = vmul.f32 1.442695, %v234_v45  ;;  %v235_v51 = vsub.f32 %v225_v3, %v233_v48  ;;  %v901_v52 = vpop.f32.mrb[18].mxu0 }
 0x254   :  { %v1910_v53 = vadd.f32 %v901_v52, %v1856_v63  ;;  %v1546_v54 = vpop.f32.mrb[19].mxu0  ;;  %v905_v55 = vsel %vm180_vm2, %v1907_v47, -inf }
 0x255   :  { %v238_v56 = vmul.f32 1.442695, %v235_v51  ;;  %906 = vmax.xlane.f32.xlu0 %v905_v55  ;;  %1627 = vpow2.f32 %v236_v50 }
 0x256   :  { %v908_v57 = vsel %vm180_vm2, %v1910_v53, -inf }
 0x257   :  { %1629 = vpow2.f32 %v238_v56 }
 0x259   :  { %v1036_v58 = vpop.f32.mrb[20].mxu0  ;;  %909 = vmax.xlane.f32.xlu0 %v908_v57 }
 0x25a   :  { %v1557_v59 = vpop.f32.mrb[21].mxu0  ;;  %v1944_v16 = vadd.f32 %v1036_v58, %v1854_v61 }
 0x25b   :  { %v1039_v60 = vpop.f32.mrb[22].mxu0 }
 0x25c   :  { %v1917_v62 = vadd.f32 %v1039_v60, %v1856_v63  ;;  %v1558_v0 = vpop.f32.mrb[23].mxu0 }
 0x25e   :  { %789 = vrot.lane.b32.xlu1 %v1809_v21, %s1721_s6  ;;  %v1046_v1 = vsel %vm180_vm2, %v1917_v62, -inf }
 0x25f   :  { %1047 = vmax.xlane.f32.xlu0 %v1046_v1  ;;  %v1923_v2 = vpop.eup %1627 }
 0x261   :  { %v1925_v3 = vpop.eup %1629  ;;  %v1174_v4 = vpop.f32.mrb[24].mxu0 }
 0x262   :  { %v1928_v5 = vadd.f32 %v1174_v4, %v1854_v61  ;;  %v1569_v7 = vpop.f32.mrb[25].mxu0  ;;  %v248_v8 = vpack.c.bf16 %v1925_v3, %v1923_v2 }
 0x263   :  { %v1177_v10 = vpop.f32.mrb[26].mxu0 }
 0x264   :  { %1490 = vmatmul.mubr.msk.bf16.vlgmr.msra.gmra.mrb[12].mxu1 %vm180_vm2, %v248_v8  ;;  %v1934_v11 = vadd.f32 %v1177_v10, %v1856_v63  ;;  %v1570_v13 = vpop.f32.mrb[27].mxu0  ;;  %v1181_v14 = vsel %vm180_vm2, %v1928_v5, -inf  ;;  %v1043_v63 = vsel %vm180_vm2, %v1944_v16, -inf }
 0x265   :  { %1182 = vmax.xlane.f32.xlu0 %v1181_v14  ;;  %1500 = vmatpush3.bf16.msra.mxu1 %v376_v33 }
 0x266   :  { %1501 = vmatprep.mubr.msk.bf16.mxu1 %vm1717_vm0, %v1716_v6  ;;  %1511 = vmatprep.subr.bf16.mxu1 %v1716_v6  ;;  %v1184_v15 = vsel %vm180_vm2, %v1934_v11, -inf }
 0x269   :  { %1185 = vmax.xlane.f32.xlu0 %v1184_v15 }
 0x27f   :  { %927 = vrot.lane.b32.xlu0 %v1809_v21, %s1722_s7 }
 0x282   :  { %1044 = vmax.xlane.f32.xlu1 %v1043_v63 }
 0x293   :  { %1065 = vrot.lane.b32.xlu1 %v1809_v21, %s1723_s8 }
 0x297   :  { %1203 = vrot.lane.b32.xlu1 %v1809_v21, %s1724_s9 }
 0x2c2   :  { %v355_v18 = vpop.xlane.xlu0 %354 }
 0x2c3   :  { %v359_v19 = vsub.f32 %v1863_v9, %v355_v18 }
 0x2c5   :  { %v361_v22 = vmul.f32 1.442695, %v359_v19 }
 0x2c6   :  { %v358_v23 = vpop.xlane.xlu0 %357 }
 0x2c7   :  { %1631 = vpow2.f32 %v361_v22  ;;  %v360_v61 = vsub.f32 %v1866_v12, %v358_v23 }
 0x2c9   :  { %v363_v24 = vmul.f32 1.442695, %v360_v61 }
 0x2ca   :  { %v493_v25 = vpop.xlane.xlu1 %492 }
 0x2cb   :  { %1633 = vpow2.f32 %v363_v24  ;;  %v497_v27 = vsub.f32 %v1873_v17, %v493_v25 }
 0x2cc   :  { %v496_v28 = vpop.xlane.xlu0 %495 }
 0x2cd   :  { %v499_v30 = vmul.f32 1.442695, %v497_v27  ;;  %v498_v31 = vsub.f32 %v1876_v20, %v496_v28 }
 0x2cf   :  { %1635 = vpow2.f32 %v499_v30  ;;  %v501_v32 = vmul.f32 1.442695, %v498_v31  ;;  %v243_v30 = vsel %vm180_vm2, %v1925_v3, 0.0 }
 0x2d1   :  { %v1632_v21 = vpop.eup %1631  ;;  %1637 = vpow2.f32 %v501_v32 }
 0x2d2   :  { %v631_v33 = vpop.xlane.xlu1 %630  ;;  %v365_v9 = vsel %vm180_vm2, %v1632_v21, 0.0 }
 0x2d3   :  { %v635_v34 = vsub.f32 %v1883_v26, %v631_v33  ;;  %366 = vadd.xlane.f32.xlu1 %v365_v9 }
 0x2d4   :  { %v634_v12 = vpop.xlane.xlu0 %633 }
 0x2d5   :  { %v1634_v36 = vpop.eup %1633  ;;  %v637_v38 = vmul.f32 1.442695, %v635_v34  ;;  %v636_v40 = vsub.f32 %v1886_v29, %v634_v12 }
 0x2d6   :  { %v368_v17 = vsel %vm180_vm2, %v1634_v36, 0.0  ;;  %v373_v42 = vpack.c.bf16 %v1634_v36, %v1632_v21 }
 0x2d7   :  { %1639 = vpow2.f32 %v637_v38  ;;  %v639_v20 = vmul.f32 1.442695, %v636_v40  ;;  %369 = vadd.xlane.f32.xlu0 %v368_v17 }
 0x2d8   :  { %1502 = vmatmul.mubr.msk.bf16.vlgmr.msra.gmra.mrb[16].mxu1 %vm180_vm2, %v373_v42 }
 0x2d9   :  { %v1636_v43 = vpop.eup %1635  ;;  %1641 = vpow2.f32 %v639_v20  ;;  %1512 = vmatpush3.bf16.msra.mxu1 %v1895_v37  ;;  %1513 = vmatprep.mubr.msk.bf16.mxu1 %vm1717_vm0, %v1716_v6 }
 0x2da   :  { %v769_v26 = vpop.xlane.xlu1 %768  ;;  %v503_v44 = vsel %vm180_vm2, %v1636_v43, 0.0  ;;  %1523 = vmatprep.subr.bf16.mxu1 %v1716_v6 }
 0x2db   :  { %v1638_v29 = vpop.eup %1637  ;;  %v773_v45 = vsub.f32 %v1893_v35, %v769_v26  ;;  %504 = vadd.xlane.f32.xlu1 %v503_v44 }
 0x2dc   :  { %v772_v46 = vpop.xlane.xlu0 %771  ;;  %v506_v50 = vsel %vm180_vm2, %v1638_v29, 0.0  ;;  %v511_v51 = vpack.c.bf16 %v1638_v29, %v1636_v43 }
 0x2dd   :  { %v775_v48 = vmul.f32 1.442695, %v773_v45  ;;  %v774_v49 = vsub.f32 %v1898_v39, %v772_v46 }
 0x2de   :  { %v790_v60 = vpop.permute.xlu1 %789 }
 0x2df   :  { %1643 = vpow2.f32 %v775_v48  ;;  %v777_v37 = vmul.f32 1.442695, %v774_v49  ;;  %507 = vadd.xlane.f32.xlu1 %v506_v50 }
 0x2e0   :  { %1514 = vmatmul.mubr.msk.bf16.vlgmr.msra.gmra.mrb[20].mxu1 %vm180_vm2, %v511_v51 }
 0x2e1   :  { %v1640_v52 = vpop.eup %1639  ;;  %1645 = vpow2.f32 %v777_v37  ;;  %1524 = vmatpush3.bf16.msra.mxu1 %v1900_v41  ;;  %1525 = vmatprep.mubr.msk.bf16.mxu1 %vm1717_vm0, %v1716_v6 }
 0x2e2   :  { %v907_v35 = vpop.xlane.xlu0 %906  ;;  %v641_v54 = vsel %vm180_vm2, %v1640_v52, 0.0  ;;  %1535 = vmatprep.subr.bf16.mxu1 %v1716_v6 }
 0x2e3   :  { %v1642_v39 = vpop.eup %1641  ;;  %v911_v55 = vsub.f32 %v1907_v47, %v907_v35  ;;  %642 = vadd.xlane.f32.xlu0 %v641_v54 }
 0x2e4   :  { %v644_v56 = vsel %vm180_vm2, %v1642_v39, 0.0  ;;  %v649_v59 = vpack.c.bf16 %v1642_v39, %v1640_v52 }
 0x2e5   :  { %v913_v57 = vmul.f32 1.442695, %v911_v55  ;;  %645 = vadd.xlane.f32.xlu1 %v644_v56 }
 0x2e6   :  { %v910_v58 = vpop.xlane.xlu0 %909 }
 0x2e7   :  { %1647 = vpow2.f32 %v913_v57  ;;  %v912_v41 = vsub.f32 %v1910_v53, %v910_v58 }
 0x2e8   :  { %1526 = vmatmul.mubr.msk.bf16.vlgmr.msra.gmra.mrb[24].mxu1 %vm180_vm2, %v649_v59 }
 0x2e9   :  { %v1644_v0 = vpop.eup %1643  ;;  %v915_v1 = vmul.f32 1.442695, %v912_v41  ;;  %1536 = vmatpush3.bf16.msra.mxu1 %v790_v60  ;;  %1537 = vmatprep.mubr.msk.bf16.mxu1 %vm1717_vm0, %v1716_v6 }
 0x2ea   :  { %v779_v47 = vsel %vm180_vm2, %v1644_v0, 0.0  ;;  %1547 = vmatprep.subr.bf16.mxu1 %v1716_v6 }
 0x2eb   :  { %v1646_v4 = vpop.eup %1645  ;;  %1649 = vpow2.f32 %v915_v1  ;;  %780 = vadd.xlane.f32.xlu0 %v779_v47 }
 0x2ec   :  { %v1048_v7 = vpop.xlane.xlu0 %1047  ;;  %v782_v8 = vsel %vm180_vm2, %v1646_v4, 0.0  ;;  %v787_v10 = vpack.c.bf16 %v1646_v4, %v1644_v0 }
 0x2ed   :  { %v1050_v53 = vsub.f32 %v1917_v62, %v1048_v7  ;;  %783 = vadd.xlane.f32.xlu1 %v782_v8 }
 0x2ef   :  { %v1053_v13 = vmul.f32 1.442695, %v1050_v53 }
 0x2f0   :  { %1538 = vmatmul.mubr.msk.bf16.vlgmr.msra.gmra.mrb[28].mxu1 %vm180_vm2, %v787_v10 }
 0x2f1   :  { %v1648_v14 = vpop.eup %1647  ;;  %1651 = vpow2.f32 %v1053_v13  ;;  %1549 = vmatprep.mubr.msk.bf16.mxu1 %vm1717_vm0, %v1716_v6 }
 0x2f2   :  { %v1183_v15 = vpop.xlane.xlu0 %1182  ;;  %v917_v63 = vsel %vm180_vm2, %v1648_v14, 0.0 }
 0x2f3   :  { %918 = vadd.xlane.f32.xlu0 %v917_v63  ;;  %v1187_v31 = vsub.f32 %v1928_v5, %v1183_v15 }
 0x2f5   :  { %v1650_v18 = vpop.eup %1649  ;;  %v1189_v33 = vmul.f32 1.442695, %v1187_v31 }
 0x2f6   :  { %v1186_v19 = vpop.xlane.xlu0 %1185  ;;  %v920_v22 = vsel %vm180_vm2, %v1650_v18, 0.0  ;;  %v925_v27 = vpack.c.bf16 %v1650_v18, %v1648_v14 }
 0x2f7   :  { %v1188_v62 = vsub.f32 %v1934_v11, %v1186_v19  ;;  %921 = vadd.xlane.f32.xlu1 %v920_v22 }
 0x2f9   :  { %v1191_v23 = vmul.f32 1.442695, %v1188_v62 }
 0x2fa   :  { %v928_v61 = vpop.permute.xlu0 %927 }
 0x2fb   :  { %v1652_v24 = vpop.eup %1651  ;;  %1653 = vpow2.f32 %v1191_v23  ;;  %1548 = vmatpush3.bf16.msra.mxu1 %v928_v61 }
 0x2fc   :  { %v1058_v25 = vsel %vm180_vm2, %v1652_v24, 0.0  ;;  %1559 = vmatprep.subr.bf16.mxu1 %v1716_v6 }
 0x2fd   :  { %1059 = vadd.xlane.f32.xlu1 %v1058_v25 }
 0x2fe   :  { %1550 = vmatmul.mubr.msk.bf16.vlgmr.msra.gmra.mrb[32].mxu1 %vm180_vm2, %v925_v27 }
 0x2ff   :  { %1561 = vmatprep.mubr.msk.bf16.mxu1 %vm1717_vm0, %v1716_v6 }
 0x305   :  { %v1654_v28 = vpop.eup %1653 }
 0x306   :  { %v1196_v11 = vsel %vm180_vm2, %v1654_v28, 0.0 }
 0x307   :  { %1197 = vadd.xlane.f32.xlu1 %v1196_v11 }
 0x30b   :  { %244 = vadd.xlane.f32.xlu1 %v243_v30 }
 0x30f   :  { %v1045_v32 = vpop.xlane.xlu1 %1044 }
 0x310   :  { %v1049_v21 = vsub.f32 %v1944_v16, %v1045_v32  ;;  %v240_v16 = vsel %vm180_vm2, %v1923_v2, 0.0 }
 0x312   :  { %v1051_v9 = vmul.f32 1.442695, %v1049_v21 }
 0x313   :  { %v1066_v34 = vpop.permute.xlu1 %1065 }
 0x314   :  { %1655 = vpow2.f32 %v1051_v9  ;;  %1560 = vmatpush3.bf16.msra.mxu1 %v1066_v34 }
 0x315   :  { %1571 = vmatprep.subr.bf16.mxu1 %v1716_v6  ;;  %1657 = vpow2.f32 %v1189_v33 }
 0x317   :  { %v1204_v3 = vpop.permute.xlu1 %1203 }
 0x31e   :  { %v1656_v12 = vpop.eup %1655 }
 0x31f   :  { %v1055_v36 = vsel %vm180_vm2, %v1656_v12, 0.0  ;;  %v1063_v38 = vpack.c.bf16 %v1652_v24, %v1656_v12  ;;  %v1658_v40 = vpop.eup %1657 }
 0x320   :  { %1056 = vadd.xlane.f32.xlu0 %v1055_v36  ;;  %v1193_v5 = vsel %vm180_vm2, %v1658_v40, 0.0  ;;  %v1201_v17 = vpack.c.bf16 %v1654_v28, %v1658_v40  ;;  %v1619_v36 = vld [vmem:[%s2096_s2] sm:$0xff]   ;;  %v1621_v40 = vld [vmem:[%s2096_s2 + $0x10] sm:$0xff]  }
 0x321   :  { %1562 = vmatmul.mubr.msk.bf16.vlgmr.msra.gmra.mrb[36].mxu1 %vm180_vm2, %v1063_v38  ;;  %1578 = vmatpush3.bf16.msra.mxu0 %v1619_v36  ;;  %v1620_v38 = vld [vmem:[%s2096_s2 + $0x8] sm:$0xff]  }
 0x322   :  { %1572 = vmatpush3.bf16.msra.mxu1 %v1204_v3  ;;  %1573 = vmatprep.mubr.msk.bf16.mxu1 %vm1717_vm0, %v1716_v6 }
 0x323   :  { %1579 = vmatprep.subr.bf16.mxu0 %v1716_v6 }
 0x324   :  { %1194 = vadd.xlane.f32.xlu0 %v1193_v5 }
 0x325   :  { %1580 = vmatpush3.bf16.msra.mxu0 %v1620_v38 }
 0x326   :  { %1581 = vmatprep.subr.bf16.mxu0 %v1716_v6 }
 0x328   :  { %241 = vadd.xlane.f32.xlu0 %v240_v16 }
 0x329   :  { %1574 = vmatmul.mubr.msk.bf16.vlgmr.msra.gmra.mrb[40].mxu1 %vm180_vm2, %v1201_v17  ;;  %1582 = vmatpush3.bf16.msra.mxu0 %v1621_v40 }
 0x32a   :  { %1583 = vmatprep.subr.bf16.mxu0 %v1716_v6 }
 0x337   :  { %v2012_v42 = vpop.f32.mrb[12].mxu1 }
 0x338   :  { %v1491_v20 = vpop.f32.mrb[13].mxu1 }
 0x339   :  { %v289_v43 = vpop.f32.mrb[14].mxu1 }
 0x33a   :  { %v1492_v26 = vpop.f32.mrb[15].mxu1 }
 0x360   :  { %v367_v44 = vpop.xlane.xlu1 %366 }
 0x364   :  { %v370_v37 = vpop.xlane.xlu0 %369 }
 0x368   :  { %v505_v29 = vpop.xlane.xlu1 %504 }
 0x36c   :  { %v508_v45 = vpop.xlane.xlu1 %507 }
 0x370   :  { %v643_v52 = vpop.xlane.xlu0 %642 }
 0x372   :  { %v646_v46 = vpop.xlane.xlu1 %645 }
 0x378   :  { %v781_v39 = vpop.xlane.xlu0 %780 }
 0x37a   :  { %v784_v48 = vpop.xlane.xlu1 %783 }
 0x380   :  { %v919_v55 = vpop.xlane.xlu0 %918 }
 0x384   :  { %v2014_v49 = vpop.xlane.xlu1 %921 }
 0x38a   :  { %v2016_v50 = vpop.xlane.xlu1 %1059 }
 0x394   :  { %v2018_v51 = vpop.xlane.xlu1 %1197 }
 0x398   :  { %v245_v2 = vpop.xlane.xlu1 %244 }
 0x399   :  { %1659 = vrcp.f32 %v245_v2 }
 0x39a   :  { %1661 = vrcp.f32 %v367_v44  ;;  %v1622_v44 = vld [vmem:[%s2096_s2 + $0x18] sm:$0xff]  }
 0x39b   :  { %1663 = vrcp.f32 %v370_v37  ;;  %1584 = vmatpush3.bf16.msra.mxu0 %v1622_v44 }
 0x39c   :  { %1665 = vrcp.f32 %v505_v29  ;;  %v1623_v29 = vld [vmem:[%s2096_s2 + $0x20] sm:$0xff]   ;;  %1585 = vmatprep.subr.bf16.mxu0 %v1716_v6 }
 0x39d   :  { %1667 = vrcp.f32 %v508_v45  ;;  %v1624_v45 = vld [vmem:[%s2096_s2 + $0x28] sm:$0xff]  }
 0x39e   :  { %1669 = vrcp.f32 %v643_v52 }
 0x39f   :  { %1671 = vrcp.f32 %v646_v46  ;;  %1586 = vmatpush3.bf16.msra.mxu0 %v1623_v29 }
 0x3a0   :  { %1587 = vmatprep.subr.bf16.mxu0 %v1716_v6 }
 0x3a3   :  { %v1660_v35 = vpop.eup %1659  ;;  %1588 = vmatpush3.bf16.msra.mxu0 %v1624_v45 }
 0x3a4   :  { %v294_v54 = vmul.f32 %v1660_v35, %v289_v43  ;;  %v1662_v56 = vpop.eup %1661  ;;  %1589 = vmatprep.subr.bf16.mxu0 %v1716_v6 }
 0x3a5   :  { %v1664_v41 = vpop.eup %1663 }
 0x3a6   :  { %296 = vst.msk [vmem:[#allocation3 + $0x8] sm:$0xff] %vm180_vm2, %v294_v54  ;;  %v1666_v7 = vpop.eup %1665 }
 0x3a7   :  { %v1668_v13 = vpop.eup %1667 }
 0x3a8   :  { %v1670_v19 = vpop.eup %1669 }
 0x3a9   :  { %v1672_v61 = vpop.eup %1671 }
 0x3ab   :  { %v415_v57 = vpop.f32.mrb[16].mxu1 }
 0x3ac   :  { %v422_v58 = vmul.f32 %v1662_v56, %v415_v57  ;;  %v1503_v59 = vpop.f32.mrb[17].mxu1 }
 0x3ad   :  { %v418_v60 = vpop.f32.mrb[18].mxu1  ;;  %v2021_v0 = vpop.xlane.xlu0 %1056 }
 0x3ae   :  { %v423_v1 = vmul.f32 %v1664_v41, %v418_v60  ;;  %v1504_v47 = vpop.f32.mrb[19].mxu1  ;;  %426 = vrot.lane.b32.xlu0 %v422_v58, %s1724_s9 }
 0x3b0   :  { %428 = vrot.lane.b32.xlu1 %v423_v1, %s1724_s9 }
 0x3b1   :  { %v2025_v4 = vpop.xlane.xlu0 %1194 }
 0x3b3   :  { %v553_v8 = vpop.f32.mrb[20].mxu1 }
 0x3b4   :  { %v560_v53 = vmul.f32 %v1666_v7, %v553_v8  ;;  %v1515_v10 = vpop.f32.mrb[21].mxu1 }
 0x3b5   :  { %v556_v14 = vpop.f32.mrb[22].mxu1  ;;  %v242_v15 = vpop.xlane.xlu0 %241 }
 0x3b6   :  { %v561_v63 = vmul.f32 %v1668_v13, %v556_v14  ;;  %1673 = vrcp.f32 %v242_v15  ;;  %v1516_v18 = vpop.f32.mrb[23].mxu1  ;;  %564 = vrot.lane.b32.xlu1 %v560_v53, %s1723_s8 }
 0x3b7   :  { %1675 = vrcp.f32 %v781_v39 }
 0x3b8   :  { %566 = vrot.lane.b32.xlu0 %v561_v63, %s1723_s8  ;;  %1677 = vrcp.f32 %v784_v48 }
 0x3b9   :  { %1679 = vrcp.f32 %v919_v55 }
 0x3ba   :  { %1681 = vrcp.f32 %v2014_v49  ;;  %v1625_v49 = vld [vmem:[%s2096_s2 + $0x30] sm:$0xff]  }
 0x3bb   :  { %v691_v22 = vpop.f32.mrb[24].mxu1  ;;  %1683 = vrcp.f32 %v2021_v0  ;;  %1590 = vmatpush3.bf16.msra.mxu0 %v1625_v49 }
 0x3bc   :  { %v698_v62 = vmul.f32 %v1670_v19, %v691_v22  ;;  %v1527_v23 = vpop.f32.mrb[25].mxu1  ;;  %1685 = vrcp.f32 %v2016_v50  ;;  %1591 = vmatprep.subr.bf16.mxu0 %v1716_v6 }
 0x3bd   :  { %v694_v24 = vpop.f32.mrb[26].mxu1  ;;  %1687 = vrcp.f32 %v2025_v4  ;;  %v1420_v23 = vld [vmem:[%s2097_s3] ss:$0 sm:$0xff] }
 0x3be   :  { %v699_v25 = vmul.f32 %v1672_v61, %v694_v24  ;;  %v1528_v27 = vpop.f32.mrb[27].mxu1  ;;  %702 = vrot.lane.b32.xlu1 %v698_v62, %s1722_s7  ;;  %1689 = vrcp.f32 %v2018_v51  ;;  %v1626_v51 = vld [vmem:[%s2096_s2 + $0x38] sm:$0xff]  }
 0x3bf   :  { %1592 = vmatpush3.bf16.msra.mxu0 %v1626_v51 }
 0x3c0   :  { %v1674_v28 = vpop.eup %1673  ;;  %704 = vrot.lane.b32.xlu0 %v699_v25, %s1722_s7 }
 0x3c1   :  { %v293_v11 = vmul.f32 %v1674_v28, %v2012_v42  ;;  %v1676_v30 = vpop.eup %1675 }
 0x3c2   :  { %v1678_v33 = vpop.eup %1677 }
 0x3c3   :  { %v829_v31 = vpop.f32.mrb[28].mxu1  ;;  %295 = vst.msk [vmem:[#allocation3] sm:$0xff] %vm180_vm2, %v293_v11  ;;  %v1680_v3 = vpop.eup %1679 }
 0x3c4   :  { %v836_v32 = vmul.f32 %v1676_v30, %v829_v31  ;;  %v1539_v21 = vpop.f32.mrb[29].mxu1  ;;  %v1682_v42 = vpop.eup %1681 }
 0x3c5   :  { %v832_v9 = vpop.f32.mrb[30].mxu1  ;;  %v1684_v46 = vpop.eup %1683 }
 0x3c6   :  { %v837_v34 = vmul.f32 %v1678_v33, %v832_v9  ;;  %v1540_v12 = vpop.f32.mrb[31].mxu1  ;;  %840 = vrot.lane.b32.xlu1 %v836_v32, %s1721_s6  ;;  %v1686_v37 = vpop.eup %1685 }
 0x3c7   :  { %v1688_v39 = vpop.eup %1687 }
 0x3c8   :  { %842 = vrot.lane.b32.xlu0 %v837_v34, %s1721_s6  ;;  %v1690_v58 = vpop.eup %1689 }
 0x3d1   :  { %v967_v5 = vpop.f32.mrb[32].mxu1 }
 0x3d2   :  { %v974_v16 = vmul.f32 %v1680_v3, %v967_v5  ;;  %v1551_v17 = vpop.f32.mrb[33].mxu1 }
 0x3d3   :  { %v970_v20 = vpop.f32.mrb[34].mxu1 }
 0x3d4   :  { %v975_v43 = vmul.f32 %v1682_v42, %v970_v20  ;;  %v1552_v26 = vpop.f32.mrb[35].mxu1  ;;  %978 = vrot.lane.b32.xlu1 %v974_v16, %s1720_s5 }
 0x3d6   :  { %980 = vrot.lane.b32.xlu0 %v975_v43, %s1720_s5 }
 0x3f4   :  { %v1105_v48 = vpop.f32.mrb[36].mxu1 }
 0x3f5   :  { %v1112_v50 = vmul.f32 %v1684_v46, %v1105_v48  ;;  %v1563_v2 = vpop.f32.mrb[37].mxu1 }
 0x3f6   :  { %v1108_v52 = vpop.f32.mrb[38].mxu1 }
 0x3f7   :  { %v1113_v35 = vmul.f32 %v1686_v37, %v1108_v52  ;;  %v1564_v54 = vpop.f32.mrb[39].mxu1  ;;  %1116 = vrot.lane.b32.xlu1 %v1112_v50, %s1718_s1 }
 0x3f9   :  { %1118 = vrot.lane.b32.xlu0 %v1113_v35, %s1718_s1 }
 0x3fc   :  { %v1243_v55 = vpop.f32.mrb[40].mxu1 }
 0x3fd   :  { %v1250_v56 = vmul.f32 %v1688_v39, %v1243_v55  ;;  %v1575_v57 = vpop.f32.mrb[41].mxu1 }
 0x3fe   :  { %v1246_v59 = vpop.f32.mrb[42].mxu1 }
 0x3ff   :  { %v1251_v41 = vmul.f32 %v1690_v58, %v1246_v59  ;;  %v1576_v60 = vpop.f32.mrb[43].mxu1  ;;  %1254 = vrot.lane.b32.xlu1 %v1250_v56, %s1719_s30 }
 0x401   :  { %1256 = vrot.lane.b32.xlu0 %v1251_v41, %s1719_s30 }
 0x420   :  { %v427_v0 = vpop.permute.xlu0 %426 }
 0x421   :  { %433 = vst.msk [vmem:[#allocation3] sm:$0xff] %vm432_vm5, %v427_v0 }
 0x422   :  { %v429_v1 = vpop.permute.xlu1 %428 }
 0x423   :  { %434 = vst.msk [vmem:[#allocation3 + $0x8] sm:$0xff] %vm432_vm5, %v429_v1 }
 0x428   :  { %v565_v6 = vpop.permute.xlu1 %564 }
 0x429   :  { %571 = vst.msk [vmem:[#allocation3] sm:$0xff] %vm570_vm6, %v565_v6 }
 0x42a   :  { %v567_v47 = vpop.permute.xlu0 %566 }
 0x42b   :  { %572 = vst.msk [vmem:[#allocation3 + $0x8] sm:$0xff] %vm570_vm6, %v567_v47 }
 0x430   :  { %v703_v4 = vpop.permute.xlu1 %702 }
 0x431   :  { %709 = vst.msk [vmem:[#allocation3] sm:$0xff] %vm708_vm7, %v703_v4 }
 0x432   :  { %v705_v7 = vpop.permute.xlu0 %704 }
 0x433   :  { %710 = vst.msk [vmem:[#allocation3 + $0x8] sm:$0xff] %vm708_vm7, %v705_v7 }
 0x438   :  { %v841_v8 = vpop.permute.xlu1 %840 }
 0x439   :  { %847 = vst.msk [vmem:[#allocation3] sm:$0xff] %vm846_vm8, %v841_v8 }
 0x43a   :  { %v843_v53 = vpop.permute.xlu0 %842 }
 0x43b   :  { %848 = vst.msk [vmem:[#allocation3 + $0x8] sm:$0xff] %vm846_vm8, %v843_v53 }
 0x446   :  { %v979_v10 = vpop.permute.xlu1 %978 }
 0x447   :  { %985 = vst.msk [vmem:[#allocation3] sm:$0xff] %vm984_vm9, %v979_v10 }
 0x448   :  { %v981_v13 = vpop.permute.xlu0 %980 }
 0x449   :  { %986 = vst.msk [vmem:[#allocation3 + $0x8] sm:$0xff] %vm984_vm9, %v981_v13 }
 0x469   :  { %v1117_v14 = vpop.permute.xlu1 %1116 }
 0x46a   :  { %1123 = vst.msk [vmem:[#allocation3] sm:$0xff] %vm1122_vm10, %v1117_v14 }
 0x46b   :  { %v1119_v15 = vpop.permute.xlu0 %1118 }
 0x46c   :  { %1124 = vst.msk [vmem:[#allocation3 + $0x8] sm:$0xff] %vm1122_vm10, %v1119_v15 }
 0x471   :  { %v1255_v63 = vpop.permute.xlu1 %1254 }
 0x472   :  { %1261 = vst.msk [vmem:[#allocation3] sm:$0xff] %vm1260_vm11, %v1255_v63 }
 0x473   :  { %v1257_v18 = vpop.permute.xlu0 %1256 }
 0x474   :  { %1262 = vst.msk [vmem:[#allocation3 + $0x8] sm:$0xff] %vm1260_vm11, %v1257_v18 }
 0x479   :  { %v1263_v19 = vld [vmem:[#allocation3] sm:$0xff] }
 0x47b   :  { %v1264_v22 = vld [vmem:[#allocation3 + $0x8] sm:$0xff] }
 0x47c   :  { %v1265_v62 = vpack.c.bf16 %v1264_v22, %v1263_v19 }
 0x47e   :  { %1594 = vmatmul.mubr.bf16.vlgmr.msra.gmra.mrb[28].mxu0 %v1265_v62 }
 0x551   :  { %v1371_v61 = vpop.f32.mrb[28].mxu0 }
 0x552   :  { %v1372_v24 = vadd.f32 %v1420_v23, %v1371_v61  ;;  %v1595_v25 = vpop.f32.mrb[29].mxu0 }
 0x553   :  { %v1374_v27 = vpop.f32.mrb[30].mxu0 }
 0x554   :  { %1378 = vst.msk [vmem:[#allocation4] sm:$0xff] %vm83_vm1, %v1372_v24  ;;  %v1375_v28 = vadd.f32 %v1420_v23, %v1374_v27  ;;  %v1596_v11 = vpop.f32.mrb[31].mxu0 }
 0x556   :  { %1379 = vst.msk [vmem:[#allocation4 + $0x8] sm:$0xff] %vm83_vm1, %v1375_v28 }
 0x557   :  { %1702 = shalt.err (!%p1699_p4)
}
 0x558   :  { %s1703_s1 = scalar_lea.hbm %s2098_s4, 256 }
 0x559   :  { %p1704_p5 = scmp.ne.s32.totalorder %s2098_s4, %s1703_s1  ;;  %p1707_p6 = scmp.lt.u32.totalorder %s1703_s1, %s2098_s4 }
 0x55b   :  { %p1709_p7 = pnand %p1707_p6, %p1704_p5 }
 0x55d   :  { %1712 = shalt.err (!%p1709_p7)
}
 0x55e   :  { %s1727_s8 = smov 128   ;;  %s1728_s9 = smov 8  }
 0x55f   :  { %1391 = dma.vmem_to_hbm [thread:$0]  %s1386_s28, 256, %s2098_s4, [#allocation5], %s1727_s8, %s1727_s8, %s1728_s9  }
 0x560   :  { %1713 = dma.done.wait [#allocation5], 256  }
 0x561   :  { %1714 = vsyncadd [#allocation5], 4294967040 }
 0x562   :  { %1395 = vsyncpa [#allocation5], 1 }

</bundles_post_ra>
